<compile_context>
chip_gen: v7x
topology: tpu7x:2x2x1
jax: 0.10.0
libtpu: 0.0.40
codegen_flags: <defaults>
</compile_context>

<pallas_src>
import functools

import jax
import jax.numpy as jnp
from jax.experimental import pallas as pl
from jax.experimental.pallas import tpu as pltpu


def _round_up(a: int, b: int) -> int:
    return ((a + b - 1) // b) * b


def _choose_tiles(n_rows: int, length: int, itemsize: int, target_bytes: int):
    """Pick (row_tile, padded_rows, len_tile, padded_len) for a (rows, length) view.

    Keeps each input block around `target_bytes` (Pallas double-buffers it) and
    respects the TPU block rules: the last two block dims must be divisible by
    (8, 128) or equal the full (padded) array dims.
    """
    # Everything fits in a single block.
    if n_rows * length * itemsize <= target_bytes:
        return n_rows, n_rows, length, length

    # Full-length rows fit with >=128 rows per block: tile rows only.
    if 128 * length * itemsize <= target_bytes:
        row_tile = (target_bytes // (length * itemsize)) // 128 * 128
        return row_tile, _round_up(n_rows, row_tile), length, length

    # L is too long: chunk L (reduction grid axis) and keep a modest row tile.
    row_tile = n_rows if n_rows < 128 else 128
    padded_rows = n_rows if row_tile == n_rows else _round_up(n_rows, row_tile)
    len_tile = max(128, (target_bytes // (row_tile * itemsize)) // 128 * 128)
    len_tile = min(len_tile, _round_up(length, 128))
    padded_len = _round_up(length, len_tile)
    return row_tile, padded_rows, len_tile, padded_len


def _concat_pool_kernel(x_ref, o_ref, max_acc, sum_acc, *, l_true, l_block, needs_mask):
    """x_ref: (TB, LT) block of the (rows, L) view.  o_ref: (TB, 2) -> [max, mean]."""
    k = pl.program_id(1)                    # L-chunk index (reduction axis, last)
    num_k = pl.num_programs(1)

    @pl.when(k == 0)
    def _init():
        max_acc[...] = jnp.full(max_acc.shape, -jnp.inf, dtype=jnp.float32)
        sum_acc[...] = jnp.zeros(sum_acc.shape, dtype=jnp.float32)

    x = x_ref[...].astype(jnp.float32)      # accumulate in f32 regardless of input dtype

    if needs_mask:
        # Mask out zero-padded tail columns (static decision; only when L was padded).
        col = k * l_block + jax.lax.broadcasted_iota(jnp.int32, x.shape, 1)
        valid = col < l_true
        x_max = jnp.where(valid, x, -jnp.inf)
        x_sum = jnp.where(valid, x, 0.0)
    else:
        x_max = x
        x_sum = x

    max_acc[...] = jnp.maximum(max_acc[...], jnp.max(x_max, axis=-1, keepdims=True))
    sum_acc[...] = sum_acc[...] + jnp.sum(x_sum, axis=-1, keepdims=True)

    @pl.when(k == num_k - 1)
    def _finalize():
        o_ref[:, 0:1] = max_acc[...].astype(o_ref.dtype)
        o_ref[:, 1:2] = (sum_acc[...] * (1.0 / l_true)).astype(o_ref.dtype)


def adaptive_concat_pool1d(x, *, target_block_bytes=8 * 1024 * 1024):
    """x: (N, C, L) -> (N, 2*C, 1), matching torch.cat([MaxPool1d(1), AvgPool1d(1)], dim=1)."""
    batch, channels, length = x.shape
    n_rows = batch * channels
    itemsize = jnp.dtype(x.dtype).itemsize

    row_tile, padded_rows, len_tile, padded_len = _choose_tiles(
        n_rows, length, itemsize, target_block_bytes)

    x2 = x.reshape(n_rows, length)
    if padded_rows != n_rows or padded_len != length:
        x2 = jnp.pad(x2, ((0, padded_rows - n_rows), (0, padded_len - length)))

    grid = (padded_rows // row_tile, padded_len // len_tile)
    kernel = functools.partial(
        _concat_pool_kernel,
        l_true=length,
        l_block=len_tile,
        needs_mask=(padded_len != length),
    )

    out2 = pl.pallas_call(
        kernel,
        out_shape=jax.ShapeDtypeStruct((padded_rows, 2), x.dtype),
        grid=grid,
        in_specs=[pl.BlockSpec((row_tile, len_tile), lambda i, k: (i, k))],
        out_specs=pl.BlockSpec((row_tile, 2), lambda i, k: (i, 0)),
        scratch_shapes=[
            pltpu.VMEM((row_tile, 1), jnp.float32),   # running max
            pltpu.VMEM((row_tile, 1), jnp.float32),   # running sum
        ],
        compiler_params=pltpu.CompilerParams(
            dimension_semantics=("parallel", "arbitrary"),
            vmem_limit_bytes=48 * 1024 * 1024,
        ),
    )(x2)

    pooled = out2[:n_rows]                                  # (N*C, 2)
    mx = pooled[:, 0].reshape(batch, channels, 1)
    av = pooled[:, 1].reshape(batch, channels, 1)
    return jnp.concatenate([mx, av], axis=1)                # (N, 2C, 1)


def _reference(x):
    return jnp.concatenate(
        [jnp.max(x, axis=-1, keepdims=True), jnp.mean(x, axis=-1, keepdims=True)],
        axis=1,
    )


if __name__ == "__main__":
    key = jax.random.PRNGKey(0)
    k1, k2 = jax.random.split(key)

    # Primary small check (module-consistent shape): N=2, C=4, L=16 -> single block path.
    x_small = jax.random.normal(k1, (2, 4, 16), dtype=jnp.float32)
    out = jax.block_until_ready(adaptive_concat_pool1d(x_small))
    assert out.shape == (2, 8, 1), out.shape
    assert jnp.allclose(out, _reference(x_small), rtol=1e-5, atol=1e-5), "mismatch (small)"

    # Secondary check exercising row tiling, L-chunk accumulation and edge masking
    # (artificially small target block size so the multi-block path runs on a small input).
    x_big = jax.random.normal(k2, (2, 200, 300), dtype=jnp.float32)
    out_b = jax.block_until_ready(
        adaptive_concat_pool1d(x_big, target_block_bytes=64 * 1024))
    assert out_b.shape == (2, 400, 1), out_b.shape
    assert jnp.allclose(out_b, _reference(x_big), rtol=1e-5, atol=1e-5), "mismatch (tiled)"

    print("KERNEL_OK")
</pallas_src>

<mosaic_0001>
module attributes {stable_mosaic.version = 11 : i64} {
  func.func @_concat_pool_kernel(%arg0: i32, %arg1: i32, %arg2: memref<8x16xf32, #tpu.memory_space<vmem>>, %arg3: memref<8x2xf32, #tpu.memory_space<vmem>>, %arg4: memref<8x1xf32, #tpu.memory_space<vmem>>, %arg5: memref<8x1xf32, #tpu.memory_space<vmem>>) attributes {dimension_semantics = [#tpu.dimension_semantics<parallel>, #tpu.dimension_semantics<arbitrary>], iteration_bounds = array<i64: 1, 1>, scalar_prefetch = 0 : i64, scratch_operands = 2 : i64, tpu.core_type = #tpu.core_type<tc>, window_params = [{transform_indices = @transform_0, window_bounds = array<i64: 8, 16>}, {transform_indices = @transform_1, window_bounds = array<i64: 8, 2>}]} {
    %c0_i32 = arith.constant 0 : i32
    %0 = arith.cmpi eq, %arg1, %c0_i32 : i32
    %1 = arith.extui %0 : i1 to i32
    %c0_i32_0 = arith.constant 0 : i32
    %2 = arith.cmpi ne, %1, %c0_i32_0 : i32
    scf.if %2 {
      %cst_13 = arith.constant 0xFF800000 : f32
      %17 = vector.broadcast %cst_13 : f32 to vector<8x1xf32>
      %c0_14 = arith.constant 0 : index
      %c0_15 = arith.constant 0 : index
      %18 = vector.load %arg4[%c0_14, %c0_15] : memref<8x1xf32, #tpu.memory_space<vmem>>, vector<8x1xf32>
      tpu.vector_store %arg4[%c0_14, %c0_15], %17 {strides = array<i32>} : memref<8x1xf32, #tpu.memory_space<vmem>>, vector<8x1xf32>,
      %cst_16 = arith.constant 0.000000e+00 : f32
      %19 = vector.broadcast %cst_16 : f32 to vector<8x1xf32>
      %c0_17 = arith.constant 0 : index
      %c0_18 = arith.constant 0 : index
      %20 = vector.load %arg5[%c0_17, %c0_18] : memref<8x1xf32, #tpu.memory_space<vmem>>, vector<8x1xf32>
      tpu.vector_store %arg5[%c0_17, %c0_18], %19 {strides = array<i32>} : memref<8x1xf32, #tpu.memory_space<vmem>>, vector<8x1xf32>,
    } else {
    }
    %c0 = arith.constant 0 : index
    %c0_1 = arith.constant 0 : index
    %3 = vector.load %arg2[%c0, %c0_1] : memref<8x16xf32, #tpu.memory_space<vmem>>, vector<8x16xf32>
    %c0_2 = arith.constant 0 : index
    %c0_3 = arith.constant 0 : index
    %4 = vector.load %arg4[%c0_2, %c0_3] : memref<8x1xf32, #tpu.memory_space<vmem>>, vector<8x1xf32>
    %cst = arith.constant dense<0xFF800000> : vector<8xf32>
    %5 = vector.multi_reduction <maximumf>, %3, %cst [1] : vector<8x16xf32> to vector<8xf32>
    %6 = vector.shape_cast %5 : vector<8xf32> to vector<8x1xf32>
    %7 = arith.maximumf %4, %6 : vector<8x1xf32>
    %c0_4 = arith.constant 0 : index
    %c0_5 = arith.constant 0 : index
    %8 = vector.load %arg4[%c0_4, %c0_5] : memref<8x1xf32, #tpu.memory_space<vmem>>, vector<8x1xf32>
    tpu.vector_store %arg4[%c0_4, %c0_5], %7 {strides = array<i32>} : memref<8x1xf32, #tpu.memory_space<vmem>>, vector<8x1xf32>,
    %c0_6 = arith.constant 0 : index
    %c0_7 = arith.constant 0 : index
    %9 = vector.load %arg5[%c0_6, %c0_7] : memref<8x1xf32, #tpu.memory_space<vmem>>, vector<8x1xf32>
    %cst_8 = arith.constant dense<0.000000e+00> : vector<8xf32>
    %10 = vector.multi_reduction <add>, %3, %cst_8 [1] : vector<8x16xf32> to vector<8xf32>
    %11 = vector.shape_cast %10 : vector<8xf32> to vector<8x1xf32>
    %12 = arith.addf %9, %11 : vector<8x1xf32>
    %c0_9 = arith.constant 0 : index
    %c0_10 = arith.constant 0 : index
    %13 = vector.load %arg5[%c0_9, %c0_10] : memref<8x1xf32, #tpu.memory_space<vmem>>, vector<8x1xf32>
    tpu.vector_store %arg5[%c0_9, %c0_10], %12 {strides = array<i32>} : memref<8x1xf32, #tpu.memory_space<vmem>>, vector<8x1xf32>,
    %c0_i32_11 = arith.constant 0 : i32
    %14 = arith.cmpi eq, %arg1, %c0_i32_11 : i32
    %15 = arith.extui %14 : i1 to i32
    %c0_i32_12 = arith.constant 0 : i32
    %16 = arith.cmpi ne, %15, %c0_i32_12 : i32
    scf.if %16 {
      %c0_13 = arith.constant 0 : index
      %c0_14 = arith.constant 0 : index
      %17 = vector.load %arg4[%c0_13, %c0_14] : memref<8x1xf32, #tpu.memory_space<vmem>>, vector<8x1xf32>
      %c0_15 = arith.constant 0 : index
      %c0_16 = arith.constant 0 : index
      %18 = vector.load %arg3[%c0_15, %c0_16] : memref<8x2xf32, #tpu.memory_space<vmem>>, vector<8x1xf32>
      tpu.vector_store %arg3[%c0_15, %c0_16], %17 {strides = array<i32>} : memref<8x2xf32, #tpu.memory_space<vmem>>, vector<8x1xf32>,
      %c0_17 = arith.constant 0 : index
      %c0_18 = arith.constant 0 : index
      %19 = vector.load %arg5[%c0_17, %c0_18] : memref<8x1xf32, #tpu.memory_space<vmem>>, vector<8x1xf32>
      %cst_19 = arith.constant 6.250000e-02 : f32
      %20 = vector.broadcast %cst_19 : f32 to vector<8x1xf32>
      %21 = arith.mulf %19, %20 : vector<8x1xf32>
      %c0_20 = arith.constant 0 : index
      %c1 = arith.constant 1 : index
      %22 = vector.load %arg3[%c0_20, %c1] : memref<8x2xf32, #tpu.memory_space<vmem>>, vector<8x1xf32>
      tpu.vector_store %arg3[%c0_20, %c1], %21 {strides = array<i32>} : memref<8x2xf32, #tpu.memory_space<vmem>>, vector<8x1xf32>,
    } else {
    }
    return
  }
  func.func @transform_0(%arg0: i32, %arg1: i32) -> (i32, i32) {
    %c0_i32 = arith.constant 0 : i32
    return %arg0, %arg1 : i32, i32
  }
  func.func @transform_1(%arg0: i32, %arg1: i32) -> (i32, i32) {
    %c0_i32 = arith.constant 0 : i32
    %c0_i32_0 = arith.constant 0 : i32
    return %arg0, %c0_i32 : i32, i32
  }
}

</mosaic_0001>

<bundles_post_ra>
// kernel: tpu_custom_call.1
= control target key start
LH: loop header
LB: loop body
LE: loop exit
PB: predicated region body
PF: predicated region fallthrough
CT: control target
= control target key end

     0   :  { %6 = vsyncpa [#allocation5], 0  ;;  %s88_s6 = smov [#allocation4]   ;;  %s125_s0 = inlined_call_operand.hbm [shape: f32[8,16], index: 0, kind: input, shape index: {}]   ;;  %s126_s1 = inlined_call_operand.vmem [shape: f32[8,2], index: 1, kind: output, shape index: {}]  }
   0x1   :  { %s13_s7 = sshll.u32 %s88_s6, 4  ;;  %s64_s10 = scalar_lea.hbm %s125_s0, 128  ;;  %s14_s7 = int_to_ptr.vmem [resolvable:$true] %s13_s7 }
   0x2   :  { %p65_p0 = scmp.ne.s32.totalorder %s125_s0, %s64_s10  ;;  %p68_p1 = scmp.lt.u32.totalorder %s64_s10, %s125_s0 }
   0x4   :  { %p70_p2 = pnand %p68_p1, %p65_p0 }
   0x6   :  { %73 = shalt.err (!%p70_p2)
}
   0x7   :  { %s74_s15 = scalar_lea.vmem %s14_s7, 128  ;;  %p79_p4 = scmp.lt.s32.totalorder %s14_s7, %s14_s7 }
   0x8   :  { %p75_p3 = scmp.ne.s32.totalorder %s14_s7, %s74_s15  ;;  %p80_p5 = scmp.lt.s32.totalorder %s74_s15, %s74_s15 }
   0xa   :  { %p81_p6 = por %p80_p5, %p79_p4 }
   0xc   :  { %p82_p7 = pnand %p81_p6, %p75_p3 }
   0xe   :  { %85 = shalt.err (!%p82_p7)
}
   0xf   :  { %16 = dma.hbm_to_vmem [thread:$0]  %s125_s0, 128, %s14_s7, [#allocation5]  }
  0x10   :  { %86 = dma.done.wait [#allocation5], 128  }
  0x11   :  { %87 = vsyncadd [#allocation5], 4294967168  ;;  %vm24_vm0 = vcmask 7168   ;;  %v89_v0 = vmov 0.0   ;;  %vm29_vm1 = vcmask 130048   ;;  %v27_v1 = vld [vmem:[#allocation4] sm:$0xff] }
  0x12   :  { %26 = vst.msk [vmem:[#allocation3] sm:$0xff] %vm24_vm0, %v89_v0  ;;  %v37_v2 = vsel %vm29_vm1, %v27_v1, 0.0  ;;  %v30_v3 = vsel %vm29_vm1, %v27_v1, -inf  ;;  %v90_v4 = vmov -inf   ;;  %s91_s0 = smov 1   ;;  %vm53_vm2 = vcmask 15368  }
  0x13   :  { %38 = vadd.xlane.f32.xlu0 %v37_v2  ;;  %25 = vst.msk [vmem:[#allocation2] sm:$0xff] %vm24_vm0, %v90_v4 }
  0x17   :  { %31 = vmax.xlane.f32.xlu0 %v30_v3 }
  0x19   :  { %v36_v5 = vld [vmem:[#allocation3] sm:$0xff] }
  0x1a   :  { %v28_v8 = vld [vmem:[#allocation2] sm:$0xff] }
  0xa0   :  { %v39_v6 = vpop.xlane.xlu0 %38 }
  0xa1   :  { %v40_v7 = vadd.f32 %v39_v6, %v36_v5 }
  0xa3   :  { %41 = vst.msk [vmem:[#allocation3] sm:$0xff] %vm24_vm0, %v40_v7 }
  0xa4   :  { %v32_v9 = vpop.xlane.xlu0 %31 }
  0xa5   :  { %v33_v10 = vmax.f32 %v28_v8, %v32_v9 }
  0xa7   :  { %35 = vst.msk [vmem:[#allocation2] sm:$0xff] %vm24_vm0, %v33_v10 }
  0xaa   :  { %v47_v11 = vld [vmem:[#allocation3] sm:$0xff] }
  0xab   :  { %v48_v12 = vmul.f32 0.0625, %v47_v11 }
  0xad   :  { %50 = vrot.lane.b32.xlu1 %v48_v12, %s91_s0 }
  0xae   :  { %v45_v13 = vld [vmem:[#allocation2] sm:$0xff] }
  0xaf   :  { %46 = vst.msk [vmem:[%s126_s1] sm:$0xff] %vm24_vm0, %v45_v13 }
 0x11f   :  { %v51_v14 = vpop.permute.xlu1 %50 }
 0x120   :  { %54 = vst.msk [vmem:[%s126_s1] sm:$0xff] %vm53_vm2, %v51_v14 }
 0x121   :  { %59 = vsyncpa [#allocation5], 1 }

</bundles_post_ra>
